<compile_context>
chip_gen: v5e
topology: v5e:2x2
jax: 0.10.0
libtpu: 0.0.40
codegen_flags: <defaults>
</compile_context>

<pallas_src>
import functools

import jax
import jax.numpy as jnp
from jax import lax
from jax.experimental import pallas as pl
from jax.experimental.pallas import tpu as pltpu

LANES = 128
SUBLANES = 8
TILE_ROWS = 2048          # (2048,128) f32 block = 1 MiB; 2 inputs x 2 buffers = 4 MiB VMEM
_PRED_PAD = -1e9          # sigmoid(_PRED_PAD) == 0 -> padded elements contribute nothing


def _num_tensorcore_slices():
    """2 slices only on chips with 2 TensorCores per JAX device (v7x / megacore)."""
    try:
        kind = jax.devices()[0].device_kind.lower()
    except Exception:
        return 1
    if ("v7" in kind) or ("v5p" in kind) or ("v4" in kind):
        return 2
    return 1


def _jaccard_kernel(p_ref, t_ref, o_ref, *, block_rows, total_tiles,
                    tiles_per_slice, rem_rows, needs_row_mask, needs_oor_guard):
    pi = pl.program_id(0)                      # parallel slice (megacore)
    ii = pl.program_id(1)                      # reduction step within slice
    tile = pi * tiles_per_slice + ii

    @pl.when(ii == 0)
    def _init():
        o_ref[...] = jnp.zeros_like(o_ref)

    def _accum(masked):
        pv = jax.nn.sigmoid(p_ref[...].astype(jnp.float32))
        tv = t_ref[...].astype(jnp.float32)
        if masked:
            # Boundary tile only: mask rows past the end of the real data.
            # Select-based (not multiply) so garbage rows can never propagate.
            row_io = lax.broadcasted_iota(jnp.int32, (block_rows, LANES), 0)
            valid = row_io < rem_rows
            pv = jnp.where(valid, pv, 0.0)
            tv = jnp.where(valid, tv, 0.0)
        # Tile-aligned partial reduce to one (8,128) vreg per accumulator:
        # pure VPU adds, no cross-lane/sublane (XLU) work per step.
        inter = (pv * tv).reshape(block_rows // SUBLANES, SUBLANES, LANES).sum(axis=0)
        psum = (pv + tv).reshape(block_rows // SUBLANES, SUBLANES, LANES).sum(axis=0)
        o_ref[0:SUBLANES, :] += inter          # rows 0..7: intersection partials
        o_ref[SUBLANES:2 * SUBLANES, :] += psum  # rows 8..15: sum(p)+sum(t) partials

    last_tile = total_tiles - 1
    if needs_row_mask:
        # total_tiles >= 2 here.  OOR tiles (tile > last_tile) fire neither branch.
        @pl.when(tile < last_tile)
        def _interior():
            _accum(masked=False)

        @pl.when(tile == last_tile)
        def _boundary():
            _accum(masked=True)
    elif needs_oor_guard:
        @pl.when(tile < total_tiles)
        def _body():
            _accum(masked=False)
    else:
        _accum(masked=False)


def jaccard_loss(predictions, targets, smooth=1e-05):
    """1 - (intersection + smooth) / (union + smooth); matches CustomJaccardLoss."""
    p = jnp.ravel(predictions)          # keep native dtype; cast to f32 in-kernel
    t = jnp.ravel(targets)
    n = p.shape[0]
    if n == 0:
        return jnp.float32(0.0)         # (0+s)/(0+s) == 1 -> loss 0

    # Tiny pad (< 1024 elements) so the flat data forms a (rows, 128) slab with
    # rows a multiple of 8.  Pad values are chosen so they contribute nothing.
    pad = (-n) % (SUBLANES * LANES)
    if pad:
        p = jnp.pad(p, (0, pad), constant_values=_PRED_PAD)
        t = jnp.pad(t, (0, pad), constant_values=0)
    rows = (n + pad) // LANES
    p2d = p.reshape(rows, LANES)
    t2d = t.reshape(rows, LANES)

    # Full-extent block for small inputs; large (TILE_ROWS,128) blocks otherwise.
    block_rows = rows if rows <= TILE_ROWS else TILE_ROWS
    total_tiles = pl.cdiv(rows, block_rows)
    num_slices = max(1, min(_num_tensorcore_slices(), total_tiles))
    tiles_per_slice = pl.cdiv(total_tiles, num_slices)

    rem_rows = rows - (total_tiles - 1) * block_rows      # rows in the last tile
    needs_row_mask = rem_rows != block_rows
    needs_oor_guard = num_slices * tiles_per_slice > total_tiles

    def in_map(pi, ii):
        tile = pi * tiles_per_slice + ii
        # OOR tiles (ragged grid) re-read the last real block; the kernel skips
        # them via pl.when so they contribute nothing.
        return (jnp.minimum(tile, total_tiles - 1), 0)

    kernel = functools.partial(
        _jaccard_kernel,
        block_rows=block_rows,
        total_tiles=total_tiles,
        tiles_per_slice=tiles_per_slice,
        rem_rows=rem_rows,
        needs_row_mask=needs_row_mask,
        needs_oor_guard=needs_oor_guard,
    )

    cost = pl.CostEstimate(
        flops=6 * n,
        transcendentals=n,
        bytes_accessed=n * (p2d.dtype.itemsize + t2d.dtype.itemsize)
        + num_slices * 2 * SUBLANES * LANES * 4,
    )

    out = pl.pallas_call(
        kernel,
        out_shape=jax.ShapeDtypeStruct((num_slices * 2 * SUBLANES, LANES), jnp.float32),
        grid_spec=pltpu.PrefetchScalarGridSpec(
            num_scalar_prefetch=0,
            grid=(num_slices, tiles_per_slice),
            in_specs=[
                pl.BlockSpec((block_rows, LANES), in_map),
                pl.BlockSpec((block_rows, LANES), in_map),
            ],
            out_specs=pl.BlockSpec((2 * SUBLANES, LANES), lambda pi, ii: (pi, 0)),
        ),
        compiler_params=pltpu.CompilerParams(
            dimension_semantics=("parallel", "arbitrary"),
        ),
        cost_estimate=cost,
    )(p2d, t2d)

    out4 = out.reshape(num_slices, 2, SUBLANES, LANES)
    inter = jnp.sum(out4[:, 0])
    psum = jnp.sum(out4[:, 1])
    union = psum - inter
    jaccard = (inter + smooth) / (union + smooth)
    return (1.0 - jaccard).astype(jnp.float32)


def jaccard_loss_ref(predictions, targets, smooth=1e-05):
    p = jax.nn.sigmoid(jnp.ravel(predictions).astype(jnp.float32))
    t = jnp.ravel(targets).astype(jnp.float32)
    inter = jnp.sum(p * t)
    union = jnp.sum(p) + jnp.sum(t) - inter
    return 1.0 - (inter + smooth) / (union + smooth)


if __name__ == "__main__":
    key = jax.random.PRNGKey(0)
    k1, k2, k3, k4 = jax.random.split(key, 4)

    # Primary small shape consistent with a segmentation-style loss: (B, C, H, W)
    preds = jax.random.normal(k1, (2, 4, 16, 16), dtype=jnp.float32)
    targets = (jax.random.uniform(k2, (2, 4, 16, 16)) > 0.5).astype(jnp.float32)
    loss = jax.block_until_ready(jaccard_loss(preds, targets))
    ref = jax.block_until_ready(jaccard_loss_ref(preds, targets))
    assert jnp.allclose(loss, ref, atol=1e-5, rtol=1e-4), (loss, ref)

    # Secondary check: exercises multi-tile grid + ragged boundary-row mask.
    preds2 = jax.random.normal(k3, (3, 4, 150, 150), dtype=jnp.float32)
    targets2 = (jax.random.uniform(k4, (3, 4, 150, 150)) > 0.5).astype(jnp.float32)
    loss2 = jax.block_until_ready(jaccard_loss(preds2, targets2))
    ref2 = jax.block_until_ready(jaccard_loss_ref(preds2, targets2))
    assert jnp.allclose(loss2, ref2, atol=1e-5, rtol=1e-4), (loss2, ref2)

    print("KERNEL_OK")
</pallas_src>

<mosaic_0001>
module attributes {stable_mosaic.version = 11 : i64} {
  func.func @_jaccard_kernel(%arg0: i32, %arg1: i32, %arg2: memref<16x128xf32, #tpu.memory_space<vmem>>, %arg3: memref<16x128xf32, #tpu.memory_space<vmem>>, %arg4: memref<16x128xf32, #tpu.memory_space<vmem>>) attributes {dimension_semantics = [#tpu.dimension_semantics<parallel>, #tpu.dimension_semantics<arbitrary>], iteration_bounds = array<i64: 1, 1>, scalar_prefetch = 0 : i64, scratch_operands = 0 : i64, tpu.core_type = #tpu.core_type<tc>, window_params = [{transform_indices = @transform_0, window_bounds = array<i64: 16, 128>}, {transform_indices = @transform_1, window_bounds = array<i64: 16, 128>}, {transform_indices = @transform_2, window_bounds = array<i64: 16, 128>}]} {
    %c0_i32 = arith.constant 0 : i32
    %0 = arith.cmpi eq, %arg1, %c0_i32 : i32
    %1 = arith.extui %0 : i1 to i32
    %c0_i32_0 = arith.constant 0 : i32
    %2 = arith.cmpi ne, %1, %c0_i32_0 : i32
    scf.if %2 {
      %cst_13 = arith.constant 0.000000e+00 : f32
      %22 = vector.broadcast %cst_13 : f32 to vector<16x128xf32>
      %c0_14 = arith.constant 0 : index
      %c0_15 = arith.constant 0 : index
      %23 = vector.load %arg4[%c0_14, %c0_15] : memref<16x128xf32, #tpu.memory_space<vmem>>, vector<16x128xf32>
      tpu.vector_store %arg4[%c0_14, %c0_15], %22 {strides = array<i32>} : memref<16x128xf32, #tpu.memory_space<vmem>>, vector<16x128xf32>,
    } else {
    }
    %c0 = arith.constant 0 : index
    %c0_1 = arith.constant 0 : index
    %3 = vector.load %arg2[%c0, %c0_1] : memref<16x128xf32, #tpu.memory_space<vmem>>, vector<16x128xf32>
    %4 = arith.negf %3 : vector<16x128xf32>
    %5 = math.exp %4 : vector<16x128xf32>
    %cst = arith.constant 1.000000e+00 : f32
    %6 = vector.broadcast %cst : f32 to vector<16x128xf32>
    %7 = arith.addf %6, %5 : vector<16x128xf32>
    %8 = arith.divf %6, %7 : vector<16x128xf32>
    %c0_2 = arith.constant 0 : index
    %c0_3 = arith.constant 0 : index
    %9 = vector.load %arg3[%c0_2, %c0_3] : memref<16x128xf32, #tpu.memory_space<vmem>>, vector<16x128xf32>
    %10 = arith.mulf %8, %9 : vector<16x128xf32>
    %11 = vector.shape_cast %10 : vector<16x128xf32> to vector<2x8x128xf32>
    %cst_4 = arith.constant dense<0.000000e+00> : vector<8x128xf32>
    %12 = vector.multi_reduction <add>, %11, %cst_4 [0] : vector<2x8x128xf32> to vector<8x128xf32>
    %13 = arith.addf %8, %9 : vector<16x128xf32>
    %14 = vector.shape_cast %13 : vector<16x128xf32> to vector<2x8x128xf32>
    %cst_5 = arith.constant dense<0.000000e+00> : vector<8x128xf32>
    %15 = vector.multi_reduction <add>, %14, %cst_5 [0] : vector<2x8x128xf32> to vector<8x128xf32>
    %c0_6 = arith.constant 0 : index
    %c0_7 = arith.constant 0 : index
    %16 = vector.load %arg4[%c0_6, %c0_7] : memref<16x128xf32, #tpu.memory_space<vmem>>, vector<8x128xf32>
    %17 = arith.addf %16, %12 : vector<8x128xf32>
    %c0_8 = arith.constant 0 : index
    %c0_9 = arith.constant 0 : index
    %18 = vector.load %arg4[%c0_8, %c0_9] : memref<16x128xf32, #tpu.memory_space<vmem>>, vector<8x128xf32>
    tpu.vector_store %arg4[%c0_8, %c0_9], %17 {strides = array<i32>} : memref<16x128xf32, #tpu.memory_space<vmem>>, vector<8x128xf32>,
    %c8 = arith.constant 8 : index
    %c0_10 = arith.constant 0 : index
    %19 = vector.load %arg4[%c8, %c0_10] : memref<16x128xf32, #tpu.memory_space<vmem>>, vector<8x128xf32>
    %20 = arith.addf %19, %15 : vector<8x128xf32>
    %c8_11 = arith.constant 8 : index
    %c0_12 = arith.constant 0 : index
    %21 = vector.load %arg4[%c8_11, %c0_12] : memref<16x128xf32, #tpu.memory_space<vmem>>, vector<8x128xf32>
    tpu.vector_store %arg4[%c8_11, %c0_12], %20 {strides = array<i32>} : memref<16x128xf32, #tpu.memory_space<vmem>>, vector<8x128xf32>,
    return
  }
  func.func @transform_0(%arg0: i32, %arg1: i32) -> (i32, i32) {
    %c1_i32 = arith.constant 1 : i32
    %0 = arith.muli %arg0, %c1_i32 : i32
    %1 = arith.addi %0, %arg1 : i32
    %c0_i32 = arith.constant 0 : i32
    %2 = arith.minsi %1, %c0_i32 : i32
    %c0_i32_0 = arith.constant 0 : i32
    %c0_i32_1 = arith.constant 0 : i32
    return %2, %c0_i32_0 : i32, i32
  }
  func.func @transform_1(%arg0: i32, %arg1: i32) -> (i32, i32) {
    %c1_i32 = arith.constant 1 : i32
    %0 = arith.muli %arg0, %c1_i32 : i32
    %1 = arith.addi %0, %arg1 : i32
    %c0_i32 = arith.constant 0 : i32
    %2 = arith.minsi %1, %c0_i32 : i32
    %c0_i32_0 = arith.constant 0 : i32
    %c0_i32_1 = arith.constant 0 : i32
    return %2, %c0_i32_0 : i32, i32
  }
  func.func @transform_2(%arg0: i32, %arg1: i32) -> (i32, i32) {
    %c0_i32 = arith.constant 0 : i32
    %c0_i32_0 = arith.constant 0 : i32
    return %arg0, %c0_i32 : i32, i32
  }
}

</mosaic_0001>

<bundles_post_ra>
// kernel: tpu_custom_call.1
= control target key start
LH: loop header
LB: loop body
LE: loop exit
PB: predicated region body
PF: predicated region fallthrough
CT: control target
= control target key end

     0   :  { %7 = vsyncpa [#allocation3], 0  ;;  %s280_s0 = inlined_call_operand.hbm [shape: f32[16,128], index: 0, kind: input, shape index: {}]   ;;  %s281_s1 = inlined_call_operand.hbm [shape: f32[16,128], index: 1, kind: input, shape index: {}]   ;;  %s282_s2 = inlined_call_operand.hbm [shape: f32[16,128], index: 2, kind: output, shape index: {}]  }
   0x1   :  { %8 = vsyncpa [#allocation6], 0 }
   0x2   :  { %9 = vsyncpa [#allocation4], 0  ;;  %s20_s11 = sshll.u32 %s280_s0, 4  ;;  %s242_s12 = smov [#allocation2]   ;;  %s21_s11 = int_to_ptr.hbm [resolvable:$true] %s20_s11 }
   0x3   :  { %s22_s13 = sshll.u32 %s242_s12, 4  ;;  %s39_s16 = sshll.u32 %s281_s1, 4  ;;  %s23_s13 = int_to_ptr.vmem [resolvable:$true] %s22_s13  ;;  %s40_s16 = int_to_ptr.hbm [resolvable:$true] %s39_s16 }
   0x4   :  { %s243_s17 = smov 128   ;;  %s244_s18 = smov 8  }
   0x5   :  { %28 = dma.hbm_to_vmem [thread:$0]  %s21_s11, 256, %s23_s13, [#allocation3], %s243_s17, %s243_s17, %s244_s18  }
   0x6   :  { %s245_s19 = smov [#allocation5]  }
   0x7   :  { %s41_s20 = sshll.u32 %s245_s19, 4  ;;  %s42_s20 = int_to_ptr.vmem [resolvable:$true] %s41_s20 }
   0x8   :  { %47 = dma.hbm_to_vmem [thread:$0]  %s40_s16, 256, %s42_s20, [#allocation6], %s243_s17, %s243_s17, %s244_s18  }
   0x9   :  { %236 = dma.done.wait [#allocation3], 256  }
   0xa   :  { %237 = vsyncadd [#allocation3], 4294967040 }
   0xb   :  { %238 = dma.done.wait [#allocation6], 256  }
   0xc   :  { %239 = vsyncadd [#allocation6], 4294967040  ;;  %v70_v0 = vld [vmem:[#allocation2] sm:$0xff]  ;;  %v71_v1 = vld [vmem:[#allocation2 + $0x8] sm:$0xff]  ;;  %s246_s0 = smov [#allocation7]   ;;  %s130_s23 = sshll.u32 %s282_s2, 4  ;;  %s131_s23 = int_to_ptr.hbm [resolvable:$true] %s130_s23 }
   0xd   :  { %v148_v2 = vmul.f32 -1.442695, %v70_v0  ;;  %v149_v3 = vmul.f32 -1.442695, %v71_v1  ;;  %v110_v24 = vld [vmem:[#allocation5] sm:$0xff]  ;;  %v111_v26 = vld [vmem:[#allocation5 + $0x8] sm:$0xff] }
   0xe   :  { %s128_s1 = sshll.u32 %s246_s0, 4  ;;  %s129_s1 = int_to_ptr.vmem [resolvable:$true] %s128_s1 }
   0xf   :  { %156 = vpow2.f32 %v148_v2 }
  0x10   :  { %158 = vpow2.f32 %v149_v3 }
  0x15   :  { %v157_v4 = vpop.eup %156 }
  0x16   :  { %v159_v5 = vpop.eup %158  ;;  %v78_v6 = vadd.f32 1.0, %v157_v4 }
  0x17   :  { %v79_v7 = vadd.f32 1.0, %v159_v5 }
  0x18   :  { %160 = vrcp.f32 %v78_v6  ;;  %vm85_vm0 = vweird.f32 %v78_v6  ;;  %v91_v11 = vand.u32 2147483648, %v78_v6  ;;  %v89_v14 = vand.u32 2147483647, %v78_v6 }
  0x19   :  { %162 = vrcp.f32 %v79_v7  ;;  %v106_v15 = vand.u32 2147483648, %v79_v7  ;;  %vm100_vm2 = vweird.f32 %v79_v7  ;;  %v104_v17 = vand.u32 2147483647, %v79_v7 }
  0x1a   :  { %v92_v19 = vor.u32 1.1754944e-38, %v91_v11  ;;  %vm90_vm5 = vcmp.eq.f32.partialorder %v89_v14, 8.507059e+37 }
  0x1b   :  { %v107_v22 = vor.u32 1.1754944e-38, %v106_v15  ;;  %vm105_vm7 = vcmp.eq.f32.partialorder %v104_v17, 8.507059e+37 }
  0x1e   :  { %v161_v8 = vpop.eup %160 }
  0x1f   :  { %v163_v9 = vpop.eup %162  ;;  %v81_v10 = vmul.f32 %v161_v8, %v78_v6  ;;  %vm86_vm1 = vweird.f32 %v161_v8 }
  0x20   :  { %v96_v12 = vmul.f32 %v163_v9, %v79_v7  ;;  %vm101_vm3 = vweird.f32 %v163_v9  ;;  %vm87_vm4 = vmor %vm85_vm0, %vm86_vm1 }
  0x21   :  { %v82_v13 = vsub.f32 1.0, %v81_v10  ;;  %vm102_vm6 = vmor %vm100_vm2, %vm101_vm3 }
  0x22   :  { %v97_v16 = vsub.f32 1.0, %v96_v12 }
  0x23   :  { %v83_v18 = vmul.f32 %v161_v8, %v82_v13 }
  0x24   :  { %v98_v20 = vmul.f32 %v163_v9, %v97_v16 }
  0x25   :  { %v84_v21 = vadd.f32 %v161_v8, %v83_v18 }
  0x26   :  { %v99_v23 = vadd.f32 %v163_v9, %v98_v20 }
  0x27   :  { %v88_v25 = vsel %vm87_vm4, %v161_v8, %v84_v21 }
  0x28   :  { %v93_v27 = vsel %vm90_vm5, %v92_v19, %v88_v25  ;;  %v103_v28 = vsel %vm102_vm6, %v163_v9, %v99_v23 }
  0x29   :  { %v108_v29 = vsel %vm105_vm7, %v107_v22, %v103_v28  ;;  %v112_v30 = vmul.f32 %v110_v24, %v93_v27  ;;  %v115_v31 = vadd.f32 %v110_v24, %v93_v27 }
  0x2a   :  { %v113_v32 = vmul.f32 %v111_v26, %v108_v29  ;;  %v116_v33 = vadd.f32 %v111_v26, %v108_v29 }
  0x2c   :  { %v114_v34 = vadd.f32 %v113_v32, %v112_v30  ;;  %v117_v35 = vadd.f32 %v116_v33, %v115_v31 }
  0x2e   :  { %120 = vst [vmem:[#allocation7] sm:$0xff] %v114_v34 }
  0x2f   :  { %123 = vst [vmem:[#allocation7 + $0x8] sm:$0xff] %v117_v35 }
  0x30   :  { %136 = dma.vmem_to_hbm [thread:$0]  %s129_s1, 256, %s131_s23, [#allocation4], %s243_s17, %s243_s17, %s244_s18  }
  0x31   :  { %240 = dma.done.wait [#allocation4], 256  }
  0x32   :  { %241 = vsyncadd [#allocation4], 4294967040 }
  0x33   :  { %141 = vsyncpa [#allocation3], 1 }
  0x34   :  { %142 = vsyncpa [#allocation6], 1 }
  0x35   :  { %143 = vsyncpa [#allocation4], 1 }

</bundles_post_ra>
